<compile_context>
chip_gen: v7x
topology: tpu7x:2x2x1
jax: 0.10.0
libtpu: 0.0.40
codegen_flags: <defaults>
</compile_context>

<pallas_src>
import math

import jax
import jax.numpy as jnp
import numpy as np
from jax.experimental import pallas as pl
from jax.experimental.pallas import tpu as pltpu

_TARGET_BLOCK_BYTES = 2 * 1024 * 1024          # ~85% of HBM roofline; v5e-safe
_LANE_CANDIDATES = (4096, 2048, 1024, 512, 256, 128)


def _relu_kernel(x_ref, o_ref):
    o_ref[...] = jnp.maximum(x_ref[...], 0)


def _sublane_pack(dtype) -> int:
    """Native sublane packing: 8 for 4-byte, 16 for 2-byte, 32 for 1-byte dtypes."""
    return max(8, 32 // jnp.dtype(dtype).itemsize)


def _relu_slab(slab):
    """ReLU of a 2-D (rows, cols) slab whose cols is a multiple of 128."""
    rows, cols = slab.shape
    itemsize = jnp.dtype(slab.dtype).itemsize
    pack = _sublane_pack(slab.dtype)

    if rows <= pack:
        row_tile = rows                      # single full-extent block (always legal)
    else:
        max_tile = (rows // pack) * pack
        target = max(pack, (_TARGET_BLOCK_BYTES // (cols * itemsize)) // pack * pack)
        row_tile = min(target, max_tile)
        if rows >= 2 * pack:
            # Guarantee >= 2 grid steps so the "parallel" axis can shard across
            # both v7x TensorCores instead of leaving one idle.
            half = max(pack, ((rows // 2 + pack - 1) // pack) * pack)
            row_tile = min(row_tile, half)

    grid = (pl.cdiv(rows, row_tile),)
    nbytes = rows * cols * itemsize
    cost = pl.CostEstimate(flops=rows * cols, transcendentals=0,
                           bytes_accessed=2 * nbytes)

    return pl.pallas_call(
        _relu_kernel,
        out_shape=jax.ShapeDtypeStruct((rows, cols), slab.dtype),
        grid=grid,
        in_specs=[pl.BlockSpec((row_tile, cols), lambda i: (i, 0))],
        out_specs=pl.BlockSpec((row_tile, cols), lambda i: (i, 0)),
        compiler_params=pltpu.CompilerParams(
            dimension_semantics=("parallel",)),
        cost_estimate=cost,
    )(slab)


def relu_pallas(x):
    """Elementwise ReLU of an arbitrarily shaped array via a Pallas TPU kernel."""
    orig_shape = x.shape
    n = math.prod(orig_shape)
    if n == 0:
        return x                               # empty: nothing to do

    flat = x.reshape(-1)
    pack = _sublane_pack(x.dtype)

    cols = next((c for c in _LANE_CANDIDATES if n % c == 0), None)
    if cols is not None:
        # Fast path: no pad, no output slice -> exactly 1 read + 1 write of x.
        rows = n // cols
        return _relu_slab(flat.reshape(rows, cols)).reshape(orig_shape)

    # Ragged fallback (numel not a multiple of 128): pad to a full slab.
    # TODO(synk): for very large ragged inputs, replace pad+slice with an
    # in-kernel masked tail store driven by a scalar-prefetched length.
    cols = 512
    rows = ((pl.cdiv(n, cols) + pack - 1) // pack) * pack
    flat = jnp.pad(flat, (0, rows * cols - n))   # ReLU(0) == 0, sliced off below
    out = _relu_slab(flat.reshape(rows, cols))
    return out.reshape(-1)[:n].reshape(orig_shape)


if __name__ == "__main__":
    key = jax.random.PRNGKey(0)

    # Spec-sized input (batch=2, channels=4, 16x16 spatial).
    x = jax.random.normal(key, (2, 4, 16, 16), jnp.float32)
    out = jax.block_until_ready(relu_pallas(x))
    np.testing.assert_allclose(np.asarray(out), np.asarray(jnp.maximum(x, 0.0)),
                               rtol=0, atol=0)

    # Larger aligned input: exercises the multi-step tiled (>= 2 grid) path.
    x2 = jax.random.normal(jax.random.PRNGKey(0), (4, 8, 128, 128), jnp.float32)
    out2 = jax.block_until_ready(relu_pallas(x2))
    np.testing.assert_allclose(np.asarray(out2), np.asarray(jnp.maximum(x2, 0.0)),
                               rtol=0, atol=0)

    # Ragged bf16 input: exercises the padded fallback path + native packing.
    x3 = jax.random.normal(jax.random.PRNGKey(0), (3, 5, 7), jnp.bfloat16)
    out3 = jax.block_until_ready(relu_pallas(x3))
    np.testing.assert_allclose(np.asarray(out3).astype(np.float32),
                               np.asarray(jnp.maximum(x3, 0)).astype(np.float32),
                               rtol=0, atol=0)

    print("KERNEL_OK")
</pallas_src>

<mosaic_0001>
module attributes {stable_mosaic.version = 11 : i64} {
  func.func @_relu_kernel(%arg0: i32, %arg1: memref<1x2048xf32, #tpu.memory_space<vmem>>, %arg2: memref<1x2048xf32, #tpu.memory_space<vmem>>) attributes {dimension_semantics = [#tpu.dimension_semantics<parallel>], iteration_bounds = array<i64: 1>, scalar_prefetch = 0 : i64, scratch_operands = 0 : i64, tpu.core_type = #tpu.core_type<tc>, window_params = [{transform_indices = @transform_0, window_bounds = array<i64: 1, 2048>}, {transform_indices = @transform_1, window_bounds = array<i64: 1, 2048>}]} {
    %c0 = arith.constant 0 : index
    %c0_0 = arith.constant 0 : index
    %0 = vector.load %arg1[%c0, %c0_0] : memref<1x2048xf32, #tpu.memory_space<vmem>>, vector<1x2048xf32>
    %cst = arith.constant 0.000000e+00 : f32
    %1 = vector.broadcast %cst : f32 to vector<1x2048xf32>
    %2 = arith.maximumf %0, %1 : vector<1x2048xf32>
    %c0_1 = arith.constant 0 : index
    %c0_2 = arith.constant 0 : index
    %3 = vector.load %arg2[%c0_1, %c0_2] : memref<1x2048xf32, #tpu.memory_space<vmem>>, vector<1x2048xf32>
    tpu.vector_store %arg2[%c0_1, %c0_2], %2 {strides = array<i32>} : memref<1x2048xf32, #tpu.memory_space<vmem>>, vector<1x2048xf32>,
    return
  }
  func.func @transform_0(%arg0: i32) -> (i32, i32) {
    %c0_i32 = arith.constant 0 : i32
    %c0_i32_0 = arith.constant 0 : i32
    return %arg0, %c0_i32 : i32, i32
  }
  func.func @transform_1(%arg0: i32) -> (i32, i32) {
    %c0_i32 = arith.constant 0 : i32
    %c0_i32_0 = arith.constant 0 : i32
    return %arg0, %c0_i32 : i32, i32
  }
}

</mosaic_0001>

<bundles_post_ra>
// kernel: tpu_custom_call.1
= control target key start
LH: loop header
LB: loop body
LE: loop exit
PB: predicated region body
PF: predicated region fallthrough
CT: control target
= control target key end

     0   :  { %6 = vsyncpa [#allocation3], 0  ;;  %s128_s0 = inlined_call_operand.hbm [shape: f32[1,2048], index: 0, kind: input, shape index: {}]   ;;  %s129_s1 = inlined_call_operand.hbm [shape: f32[1,2048], index: 1, kind: output, shape index: {}]  }
   0x1   :  { %7 = vsyncpa [#allocation4], 0  ;;  %s92_s6 = smov [#allocation2]   ;;  %s44_s10 = scalar_lea.hbm %s128_s0, 256 }
   0x2   :  { %s14_s7 = sshll.u32 %s92_s6, 4  ;;  %p45_p0 = scmp.ne.s32.totalorder %s128_s0, %s44_s10  ;;  %s15_s7 = int_to_ptr.vmem [resolvable:$true] %s14_s7 }
   0x3   :  { %p48_p1 = scmp.lt.u32.totalorder %s44_s10, %s128_s0 }
   0x5   :  { %p50_p2 = pnand %p48_p1, %p45_p0 }
   0x7   :  { %53 = shalt.err (!%p50_p2)
}
   0x8   :  { %s54_s15 = scalar_lea.vmem %s15_s7, 256  ;;  %p59_p4 = scmp.lt.s32.totalorder %s15_s7, %s15_s7 }
   0x9   :  { %p55_p3 = scmp.ne.s32.totalorder %s15_s7, %s54_s15  ;;  %p60_p5 = scmp.lt.s32.totalorder %s54_s15, %s54_s15 }
   0xb   :  { %p61_p6 = por %p60_p5, %p59_p4 }
   0xd   :  { %p62_p7 = pnand %p61_p6, %p55_p3 }
   0xf   :  { %65 = shalt.err (!%p62_p7)
}
  0x10   :  { %17 = dma.hbm_to_vmem [thread:$0]  %s128_s0, 256, %s15_s7, [#allocation3]  }
  0x11   :  { %88 = dma.done.wait [#allocation3], 256  }
  0x12   :  { %89 = vsyncadd [#allocation3], 4294967040  ;;  %s93_s18 = smov [#allocation5]   ;;  %v21_v0 = vld [vmem:[#allocation2] sm:$0xff]  ;;  %v22_v1 = vld [vmem:[#allocation2 + $0x8] sm:$0xff] }
  0x13   :  { %s33_s19 = sshll.u32 %s93_s18, 4  ;;  %v23_v2 = vmax.f32 %v21_v0, 0.0  ;;  %v24_v3 = vmax.f32 %v22_v1, 0.0  ;;  %s34_s19 = int_to_ptr.vmem [resolvable:$true] %s33_s19 }
  0x14   :  { %s66_s20 = scalar_lea.vmem %s34_s19, 256  ;;  %p71_p9 = scmp.lt.s32.totalorder %s34_s19, %s34_s19 }
  0x15   :  { %25 = vst [vmem:[#allocation5] sm:$0xff] %v23_v2  ;;  %26 = vst [vmem:[#allocation5 + $0x8] sm:$0xff] %v24_v3  ;;  %p67_p8 = scmp.ne.s32.totalorder %s34_s19, %s66_s20  ;;  %p72_p10 = scmp.lt.s32.totalorder %s66_s20, %s66_s20 }
  0x17   :  { %p73_p11 = por %p72_p10, %p71_p9 }
  0x19   :  { %p74_p12 = pnand %p73_p11, %p67_p8 }
  0x1b   :  { %77 = shalt.err (!%p74_p12)
}
  0x1c   :  { %s78_s22 = scalar_lea.hbm %s129_s1, 256 }
  0x1d   :  { %p79_p13 = scmp.ne.s32.totalorder %s129_s1, %s78_s22  ;;  %p82_p0 = scmp.lt.u32.totalorder %s78_s22, %s129_s1 }
  0x1f   :  { %p84_p1 = pnand %p82_p0, %p79_p13 }
  0x21   :  { %87 = shalt.err (!%p84_p1)
}
  0x22   :  { %36 = dma.vmem_to_hbm [thread:$0]  %s34_s19, 256, %s129_s1, [#allocation4]  }
  0x23   :  { %90 = dma.done.wait [#allocation4], 256  }
  0x24   :  { %91 = vsyncadd [#allocation4], 4294967040 }
  0x25   :  { %40 = vsyncpa [#allocation3], 1 }
  0x26   :  { %41 = vsyncpa [#allocation4], 1 }

</bundles_post_ra>
